<compile_context>
chip_gen: v7x
topology: tpu7x:2x2x1
jax: 0.10.0
libtpu: 0.0.40
codegen_flags: <defaults>
</compile_context>

<pallas_src>
import functools

import jax
import jax.numpy as jnp
from jax.experimental import pallas as pl
from jax.experimental.pallas import tpu as pltpu


_ACTIVATIONS = {
    "silu": lambda x: x * jax.nn.sigmoid(x),
    "relu": lambda x: jnp.maximum(x, 0.0),
    "tanh": jnp.tanh,
    "sigmoid": jax.nn.sigmoid,
    "identity": lambda x: x,
    None: lambda x: x,
}

_TRANSFORMS = {
    None: lambda x: x,
    "identity": lambda x: x,
    "sigmoid": jax.nn.sigmoid,
    "exp": jnp.exp,
    "tanh": jnp.tanh,
    "relu": lambda x: jnp.maximum(x, 0.0),
    "softplus": jax.nn.softplus,
    "abs": jnp.abs,
    "square": lambda x: x * x,
    # Valid now because the stored output is NOT lane-padded.
    "softmax": lambda x: jax.nn.softmax(x, axis=-1),
}


def _act_fn(a):
    return a if callable(a) else _ACTIVATIONS[a]


def _tfm_fn(t):
    return t if callable(t) else _TRANSFORMS[t]


def _apply_transform(out, transform):
    if transform is None:
        return out
    if isinstance(transform, tuple):
        # Per-output pointwise transforms: column i gets transform[i].
        # TODO(synk): 'softmax' inside a per-output list (column-local softmax) is not supported.
        col = jax.lax.broadcasted_iota(jnp.int32, out.shape, 1)
        res = out
        for i, t in enumerate(transform):
            res = jnp.where(col == i, _tfm_fn(t)(out), res)
        return res
    return _tfm_fn(transform)(out)


def _round_up(x, m):
    return ((x + m - 1) // m) * m


def _num_tensorcores():
    """Best-effort TensorCores-per-chip (v5e/v6e: 1, v7x: 2). Never raises."""
    try:
        info = pltpu.get_tpu_info()
        for name in ("num_cores", "core_count", "num_tensorcores",
                     "tensorcore_count", "num_cores_per_chip"):
            v = getattr(info, name, None)
            if isinstance(v, int) and v > 0:
                return v
    except Exception:
        pass
    try:
        kind = jax.devices()[0].device_kind.lower()
        if "v4" in kind or "v7" in kind:
            return 2
    except Exception:
        pass
    return 1


def _vmem_capacity_bytes():
    """Best-effort per-core VMEM capacity; conservative (v7x) fallback."""
    try:
        v = getattr(pltpu.get_tpu_info(), "vmem_capacity_bytes", None)
        if v:
            return int(v)
    except Exception:
        pass
    return 64 << 20


def _padded_vmem_bytes(rows, cols, dtype):
    """Hardware-padded VMEM footprint of a 2D buffer (lane=128, sublane by dtype width)."""
    itemsize = jnp.dtype(dtype).itemsize
    sublane = 32 // itemsize if itemsize in (1, 2, 4) else 8
    return _round_up(max(int(rows), 1), sublane) * _round_up(max(int(cols), 1), 128) * itemsize


def _choose_batch_tile(batch, num_cores=1, cap=4096):
    """8-aligned batch tile.  Single-TC chips: one tile up to `cap` (no forced split).
    Multi-TC chips: pick a tile so the number of grid steps is a multiple of the core count."""
    b8 = max(8, _round_up(batch, 8))
    if num_cores <= 1 or b8 <= 8 * num_cores:
        return min(cap, b8)
    n_steps = _round_up(pl.cdiv(b8, cap), num_cores)
    return min(cap, _round_up(pl.cdiv(b8, n_steps), 8))


def _mlp_kernel(*refs, n_layers, activations, transform, compute_dtype):
    # refs = (x_ref, w0, b0, w1, b1, ..., w_out, b_out, o_ref)
    x_ref = refs[0]
    o_ref = refs[-1]
    p = refs[1:-1]

    # Elementwise carry stays f32 (v5e has no bf16 VPU/EUP); only MXU operands are cast.
    h = x_ref[...].astype(jnp.float32)

    # Hidden layers: Linear + activation (fully unrolled at trace time).
    for i in range(n_layers):
        w = p[2 * i][...]        # [in, out]  compute_dtype
        b = p[2 * i + 1][...]    # [1,  out]  f32
        h = jnp.dot(h.astype(compute_dtype), w, preferred_element_type=jnp.float32) + b
        h = _act_fn(activations[i])(h)

    # Output layer (unpadded N = n_outputs) + optional transform.
    w_out = p[2 * n_layers][...]
    b_out = p[2 * n_layers + 1][...]
    out = jnp.dot(h.astype(compute_dtype), w_out, preferred_element_type=jnp.float32) + b_out
    out = _apply_transform(out, transform)

    # Store exactly n_outputs columns (masked vst; tiny HBM writeback).
    o_ref[...] = out.astype(o_ref.dtype)


def net_forward(x, params, *, activation="silu", transform=None, batch_tile=None,
                compute_dtype=jnp.bfloat16, out_dtype=None):
    """Fused Pallas forward pass.

    x:       [B, n_inputs]  float32
    params:  list [(W0, b0), ..., (W_out, b_out)]; W_i: [in_i, out_i], b_i: [out_i]
             (weights are [in, out], i.e. transposed vs. nn.Linear's [out, in]).
    """
    B, n_in = x.shape
    n_layers = len(params) - 1
    n_out = params[-1][0].shape[1]
    out_dtype = x.dtype if out_dtype is None else out_dtype

    # Activation(s): str / callable / list per hidden layer.
    if isinstance(activation, (list, tuple)):
        if len(activation) != n_layers:
            raise ValueError("number of activations must match n_layers")
        activations = tuple(activation)
    else:
        activations = (activation,) * n_layers

    # Transform: None / str / callable / list of pointwise per-output transforms.
    if isinstance(transform, list):
        if len(transform) != n_out:
            raise ValueError("number of transforms must match n_outputs")
        transform = tuple(transform)

    # --- batch tiling (no wrapper-side padding; Pallas handles the ragged last block) ----
    num_cores = _num_tensorcores()
    if batch_tile is None:
        batch_tile = _choose_batch_tile(B, num_cores)
    batch_tile = max(8, _round_up(int(batch_tile), 8))
    grid_b = pl.cdiv(B, batch_tile)

    # --- parameters: weights -> compute_dtype, biases -> f32 [1, out] (no padding) -------
    flat = []
    for w, b in params:
        flat.append(jnp.asarray(w, compute_dtype))
        flat.append(jnp.asarray(b, jnp.float32).reshape(1, -1))

    # --- BlockSpecs -----------------------------------------------------------------------
    in_specs = [pl.BlockSpec((batch_tile, n_in), lambda i: (i, 0))]
    for pobj in flat:
        # Full-array block, constant index -> parameters stay resident in VMEM across steps.
        in_specs.append(pl.BlockSpec(pobj.shape, lambda i: (0, 0)))
    out_spec = pl.BlockSpec((batch_tile, n_out), lambda i: (i, 0))

    # --- VMEM budget from hardware-padded shapes, clamped per-chip -------------------------
    max_feat = max([n_in] + [w.shape[1] for w, _ in params])
    param_bytes = 2 * sum(_padded_vmem_bytes(p.shape[0], p.shape[1], p.dtype) for p in flat)
    io_bytes = 2 * (_padded_vmem_bytes(batch_tile, n_in, x.dtype)
                    + _padded_vmem_bytes(batch_tile, n_out, out_dtype))
    act_bytes = 4 * _padded_vmem_bytes(batch_tile, max_feat, jnp.float32)
    vmem_limit = int(1.25 * (param_bytes + io_bytes + act_bytes)) + (2 << 20)
    vmem_cap = _vmem_capacity_bytes()
    vmem_limit = max(4 << 20, min(vmem_limit, min(100 << 20, (vmem_cap * 3) // 4)))

    kernel = functools.partial(
        _mlp_kernel,
        n_layers=n_layers,
        activations=activations,
        transform=transform,
        compute_dtype=compute_dtype,
    )

    out = pl.pallas_call(
        kernel,
        out_shape=jax.ShapeDtypeStruct((B, n_out), out_dtype),
        grid_spec=pltpu.PrefetchScalarGridSpec(
            num_scalar_prefetch=0,
            grid=(grid_b,),
            in_specs=in_specs,
            out_specs=out_spec,
        ),
        compiler_params=pltpu.CompilerParams(
            dimension_semantics=("parallel",),
            vmem_limit_bytes=vmem_limit,
        ),
    )(x, *flat)

    return out


def init_net_params(key, n_inputs, n_outputs, width=32, n_layers=2):
    """Deterministic init mirroring the PyTorch module: weights ~ N(0, 0.05), biases = 0."""
    dims = [n_inputs] + [width] * n_layers + [n_outputs]
    params = []
    for i in range(len(dims) - 1):
        key, sub = jax.random.split(key)
        w = 0.05 * jax.random.normal(sub, (dims[i], dims[i + 1]), dtype=jnp.float32)
        b = jnp.zeros((dims[i + 1],), dtype=jnp.float32)
        params.append((w, b))
    return params


def net_forward_ref(x, params, activation="silu", transform=None):
    """Pure-JAX f32 reference for correctness checking."""
    act = _act_fn(activation)
    h = x
    for w, b in params[:-1]:
        h = act(h @ w + b)
    w_out, b_out = params[-1]
    out = h @ w_out + b_out
    return _apply_transform(out, tuple(transform) if isinstance(transform, list) else transform)


if __name__ == "__main__":
    key = jax.random.PRNGKey(0)
    k_x, k_p = jax.random.split(key)

    # Net(n_inputs=4, n_outputs=3, width=32, n_layers=2, activation='silu', transform=None)
    B, n_inputs, n_outputs, width, n_layers = 8, 4, 3, 32, 2

    x = jax.random.normal(k_x, (B, n_inputs), dtype=jnp.float32)
    params = init_net_params(k_p, n_inputs, n_outputs, width=width, n_layers=n_layers)

    ref = net_forward_ref(x, params)

    # Exact path: f32 MXU operands — matches the f32 reference tightly.
    out_f32 = jax.block_until_ready(net_forward(x, params, compute_dtype=jnp.float32))
    assert out_f32.shape == (B, n_outputs)
    assert jnp.allclose(out_f32, ref, atol=1e-5, rtol=1e-5)

    # Fast path (default): bf16 MXU operands, f32 accumulation + f32 elementwise.
    out_bf16 = jax.block_until_ready(net_forward(x, params))
    assert out_bf16.shape == (B, n_outputs)
    assert jnp.allclose(out_bf16, ref, atol=5e-3, rtol=5e-2)

    # Ragged batch (B not a multiple of the tile): exercises Pallas partial-block handling
    # (no wrapper-side jnp.pad of x, OOB output rows never written back).
    B2 = 13
    x2 = jax.random.normal(k_x, (B2, n_inputs), dtype=jnp.float32)
    ref2 = net_forward_ref(x2, params)
    out2 = jax.block_until_ready(net_forward(x2, params, batch_tile=8))
    assert out2.shape == (B2, n_outputs)
    assert jnp.allclose(out2, ref2, atol=5e-3, rtol=5e-2)

    print("KERNEL_OK")
</pallas_src>

<mosaic_0001>
module attributes {stable_mosaic.version = 11 : i64} {
  func.func @_mlp_kernel(%arg0: i32, %arg1: memref<8x4xf32, #tpu.memory_space<vmem>>, %arg2: memref<4x32xf32, #tpu.memory_space<vmem>>, %arg3: memref<1x32xf32, #tpu.memory_space<vmem>>, %arg4: memref<32x32xf32, #tpu.memory_space<vmem>>, %arg5: memref<1x32xf32, #tpu.memory_space<vmem>>, %arg6: memref<32x3xf32, #tpu.memory_space<vmem>>, %arg7: memref<1x3xf32, #tpu.memory_space<vmem>>, %arg8: memref<8x3xf32, #tpu.memory_space<vmem>>) attributes {dimension_semantics = [#tpu.dimension_semantics<parallel>], iteration_bounds = array<i64: 1>, scalar_prefetch = 0 : i64, scratch_operands = 0 : i64, tpu.core_type = #tpu.core_type<tc>, window_params = [{transform_indices = @transform_0, window_bounds = array<i64: 8, 4>}, {pipeline_mode = #tpu.pipeline_mode<synchronous>, transform_indices = @transform_1, window_bounds = array<i64: 4, 32>}, {pipeline_mode = #tpu.pipeline_mode<synchronous>, transform_indices = @transform_2, window_bounds = array<i64: 1, 32>}, {pipeline_mode = #tpu.pipeline_mode<synchronous>, transform_indices = @transform_3, window_bounds = array<i64: 32, 32>}, {pipeline_mode = #tpu.pipeline_mode<synchronous>, transform_indices = @transform_4, window_bounds = array<i64: 1, 32>}, {pipeline_mode = #tpu.pipeline_mode<synchronous>, transform_indices = @transform_5, window_bounds = array<i64: 32, 3>}, {pipeline_mode = #tpu.pipeline_mode<synchronous>, transform_indices = @transform_6, window_bounds = array<i64: 1, 3>}, {transform_indices = @transform_7, window_bounds = array<i64: 8, 3>}]} {
    %c0 = arith.constant 0 : index
    %c0_0 = arith.constant 0 : index
    %0 = vector.load %arg1[%c0, %c0_0] : memref<8x4xf32, #tpu.memory_space<vmem>>, vector<8x4xf32>
    %c0_1 = arith.constant 0 : index
    %c0_2 = arith.constant 0 : index
    %1 = vector.load %arg2[%c0_1, %c0_2] : memref<4x32xf32, #tpu.memory_space<vmem>>, vector<4x32xf32>
    %c0_3 = arith.constant 0 : index
    %c0_4 = arith.constant 0 : index
    %2 = vector.load %arg3[%c0_3, %c0_4] : memref<1x32xf32, #tpu.memory_space<vmem>>, vector<1x32xf32>
    %cst = arith.constant dense<0.000000e+00> : vector<8x32xf32>
    %3 = tpu.matmul %0, %1, %cst {dimension_numbers = #tpu.dot_dimension_numbers<[1], [0], [0], [1], [0, 0, 1, 1], [], []>} : vector<8x4xf32>, vector<4x32xf32>, vector<8x32xf32> -> vector<8x32xf32>
    %4 = vector.broadcast %2 : vector<1x32xf32> to vector<8x32xf32>
    %5 = arith.addf %3, %4 : vector<8x32xf32>
    %6 = arith.negf %5 : vector<8x32xf32>
    %7 = math.exp %6 : vector<8x32xf32>
    %cst_5 = arith.constant 1.000000e+00 : f32
    %8 = vector.broadcast %cst_5 : f32 to vector<8x32xf32>
    %9 = arith.addf %8, %7 : vector<8x32xf32>
    %10 = arith.divf %8, %9 : vector<8x32xf32>
    %11 = arith.mulf %5, %10 : vector<8x32xf32>
    %c0_6 = arith.constant 0 : index
    %c0_7 = arith.constant 0 : index
    %12 = vector.load %arg4[%c0_6, %c0_7] : memref<32x32xf32, #tpu.memory_space<vmem>>, vector<32x32xf32>
    %c0_8 = arith.constant 0 : index
    %c0_9 = arith.constant 0 : index
    %13 = vector.load %arg5[%c0_8, %c0_9] : memref<1x32xf32, #tpu.memory_space<vmem>>, vector<1x32xf32>
    %cst_10 = arith.constant dense<0.000000e+00> : vector<8x32xf32>
    %14 = tpu.matmul %11, %12, %cst_10 {dimension_numbers = #tpu.dot_dimension_numbers<[1], [0], [0], [1], [0, 0, 1, 1], [], []>} : vector<8x32xf32>, vector<32x32xf32>, vector<8x32xf32> -> vector<8x32xf32>
    %15 = vector.broadcast %13 : vector<1x32xf32> to vector<8x32xf32>
    %16 = arith.addf %14, %15 : vector<8x32xf32>
    %17 = arith.negf %16 : vector<8x32xf32>
    %18 = math.exp %17 : vector<8x32xf32>
    %cst_11 = arith.constant 1.000000e+00 : f32
    %19 = vector.broadcast %cst_11 : f32 to vector<8x32xf32>
    %20 = arith.addf %19, %18 : vector<8x32xf32>
    %21 = arith.divf %19, %20 : vector<8x32xf32>
    %22 = arith.mulf %16, %21 : vector<8x32xf32>
    %c0_12 = arith.constant 0 : index
    %c0_13 = arith.constant 0 : index
    %23 = vector.load %arg6[%c0_12, %c0_13] : memref<32x3xf32, #tpu.memory_space<vmem>>, vector<32x3xf32>
    %c0_14 = arith.constant 0 : index
    %c0_15 = arith.constant 0 : index
    %24 = vector.load %arg7[%c0_14, %c0_15] : memref<1x3xf32, #tpu.memory_space<vmem>>, vector<1x3xf32>
    %cst_16 = arith.constant dense<0.000000e+00> : vector<8x3xf32>
    %25 = tpu.matmul %22, %23, %cst_16 {dimension_numbers = #tpu.dot_dimension_numbers<[1], [0], [0], [1], [0, 0, 1, 1], [], []>} : vector<8x32xf32>, vector<32x3xf32>, vector<8x3xf32> -> vector<8x3xf32>
    %26 = vector.broadcast %24 : vector<1x3xf32> to vector<8x3xf32>
    %27 = arith.addf %25, %26 : vector<8x3xf32>
    %c0_17 = arith.constant 0 : index
    %c0_18 = arith.constant 0 : index
    %28 = vector.load %arg8[%c0_17, %c0_18] : memref<8x3xf32, #tpu.memory_space<vmem>>, vector<8x3xf32>
    tpu.vector_store %arg8[%c0_17, %c0_18], %27 {strides = array<i32>} : memref<8x3xf32, #tpu.memory_space<vmem>>, vector<8x3xf32>,
    return
  }
  func.func @transform_0(%arg0: i32) -> (i32, i32) {
    %c0_i32 = arith.constant 0 : i32
    %c0_i32_0 = arith.constant 0 : i32
    return %arg0, %c0_i32 : i32, i32
  }
  func.func @transform_1(%arg0: i32) -> (i32, i32) {
    %c0_i32 = arith.constant 0 : i32
    %c0_i32_0 = arith.constant 0 : i32
    %c0_i32_1 = arith.constant 0 : i32
    return %c0_i32, %c0_i32_0 : i32, i32
  }
  func.func @transform_2(%arg0: i32) -> (i32, i32) {
    %c0_i32 = arith.constant 0 : i32
    %c0_i32_0 = arith.constant 0 : i32
    %c0_i32_1 = arith.constant 0 : i32
    return %c0_i32, %c0_i32_0 : i32, i32
  }
  func.func @transform_3(%arg0: i32) -> (i32, i32) {
    %c0_i32 = arith.constant 0 : i32
    %c0_i32_0 = arith.constant 0 : i32
    %c0_i32_1 = arith.constant 0 : i32
    return %c0_i32, %c0_i32_0 : i32, i32
  }
  func.func @transform_4(%arg0: i32) -> (i32, i32) {
    %c0_i32 = arith.constant 0 : i32
    %c0_i32_0 = arith.constant 0 : i32
    %c0_i32_1 = arith.constant 0 : i32
    return %c0_i32, %c0_i32_0 : i32, i32
  }
  func.func @transform_5(%arg0: i32) -> (i32, i32) {
    %c0_i32 = arith.constant 0 : i32
    %c0_i32_0 = arith.constant 0 : i32
    %c0_i32_1 = arith.constant 0 : i32
    return %c0_i32, %c0_i32_0 : i32, i32
  }
  func.func @transform_6(%arg0: i32) -> (i32, i32) {
    %c0_i32 = arith.constant 0 : i32
    %c0_i32_0 = arith.constant 0 : i32
    %c0_i32_1 = arith.constant 0 : i32
    return %c0_i32, %c0_i32_0 : i32, i32
  }
  func.func @transform_7(%arg0: i32) -> (i32, i32) {
    %c0_i32 = arith.constant 0 : i32
    %c0_i32_0 = arith.constant 0 : i32
    return %arg0, %c0_i32 : i32, i32
  }
}

</mosaic_0001>

<bundles_post_ra>
// kernel: tpu_custom_call.1
= control target key start
LH: loop header
LB: loop body
LE: loop exit
PB: predicated region body
PF: predicated region fallthrough
CT: control target
= control target key end

     0   :  { %vm39_vm0 = vcmask 1043456   ;;  %vm35_vm1 = vcmask 31744   ;;  %v373_v0 = vmov 0.0   ;;  %vm374_vm2 = vmmov 0   ;;  %s460_s1 = inlined_call_operand.vmem [shape: f32[4,32], index: 1, kind: input, shape index: {}]   ;;  %s461_s0 = inlined_call_operand.vmem [shape: f32[8,4], index: 0, kind: input, shape index: {}]   ;;  %s462_s3 = inlined_call_operand.vmem [shape: f32[32,32], index: 3, kind: input, shape index: {}]   ;;  %s463_s2 = inlined_call_operand.vmem [shape: f32[1,32], index: 2, kind: input, shape index: {}]   ;;  %s464_s5 = inlined_call_operand.vmem [shape: f32[32,3], index: 5, kind: input, shape index: {}]   ;;  %s465_s4 = inlined_call_operand.vmem [shape: f32[1,32], index: 4, kind: input, shape index: {}]   ;;  %s466_s6 = inlined_call_operand.vmem [shape: f32[1,3], index: 6, kind: input, shape index: {}]   ;;  %s467_s7 = inlined_call_operand.vmem [shape: f32[8,3], index: 7, kind: output, shape index: {}]  }
   0x1   :  { %323 = vmatprep.subr.mxu0 %v373_v0  ;;  %v27_v1 = vld [vmem:[%s460_s1] sm:$0xf]  ;;  %325 = vmatprep.mubr.msk.f32.mxu0 %vm374_vm2, %v373_v0  ;;  %v121_v4 = vld [vmem:[%s462_s3 + $0x8] sm:$0xff]  ;;  %v375_v6 = vmov 0.0|0.0   ;;  %v122_v7 = vld [vmem:[%s462_s3 + $0x10] sm:$0xff]  ;;  %vm131_vm3 = vcmask 261120  }
   0x2   :  { %v26_v2 = vld [vmem:[%s461_s0] sm:$0xff]  ;;  %324 = vmatpush3.msk.msra.mxu0 %vm39_vm0, %v27_v1  ;;  %336 = vmatprep.mubr.msk.f32.mxu1 %vm374_vm2, %v373_v0  ;;  %v123_v8 = vld [vmem:[%s462_s3 + $0x18] sm:$0xff]  ;;  %v213_v20 = vld [vmem:[%s464_s5 + $0x8] sm:$0xff]  ;;  %vm296_vm4 = vcmask 23552  }
   0x3   :  { %326 = vmatmul.mubr.msk.f32.vlgmr.msra.gmra.mrb[0].mxu0 %vm35_vm1, %v26_v2  ;;  %v120_v3 = vld [vmem:[%s462_s3] sm:$0xff]  ;;  %350 = vmatprep.subr.bf16.mxu1 %v375_v6  ;;  %v354_v9 = vpack.c.bf16 %v123_v8, %v122_v7  ;;  %v214_v22 = vld [vmem:[%s464_s5 + $0x10] sm:$0xff]  ;;  %v215_v23 = vld [vmem:[%s464_s5 + $0x18] sm:$0xff] }
   0x4   :  { %347 = vmatprep.mubr.msk.f32.mxu0 %vm374_vm2, %v373_v0  ;;  %v351_v5 = vpack.c.bf16 %v121_v4, %v120_v3  ;;  %356 = vmatprep.subr.bf16.mxu0 %v375_v6  ;;  %v302_v10 = vld [vmem:[%s463_s2] ss:$0 sm:$0xff]  ;;  %v360_v24 = vpack.c.bf16 %v215_v23, %v214_v22 }
   0x5   :  { %v212_v19 = vld [vmem:[%s464_s5] sm:$0xff] }
   0x6   :  { %352 = vmatpush3.bf16.msra.mxu1 %v351_v5  ;;  %v357_v21 = vpack.c.bf16 %v213_v20, %v212_v19  ;;  %v306_v25 = vld [vmem:[%s465_s4] ss:$0 sm:$0xff] }
   0x7   :  { %353 = vmatprep.subr.bf16.mxu1 %v375_v6  ;;  %v309_v34 = vld [vmem:[%s466_s6] ss:$0 sm:$0xff] }
   0x8   :  { %358 = vmatpush3.bf16.msra.mxu0 %v357_v21 }
   0x9   :  { %359 = vmatprep.subr.bf16.mxu0 %v375_v6 }
   0xa   :  { %355 = vmatpush3.bf16.msra.mxu1 %v354_v9 }
   0xc   :  { %361 = vmatpush3.bf16.msra.mxu0 %v360_v24 }
  0xd6   :  { %v109_v11 = vpop.f32.mrb[0].mxu0 }
  0xd7   :  { %v110_v12 = vadd.f32 %v302_v10, %v109_v11  ;;  %v327_v13 = vpop.f32.mrb[1].mxu0 }
  0xd9   :  { %v305_v14 = vmul.f32 -1.442695, %v110_v12 }
  0xdb   :  { %365 = vpow2.f32 %v305_v14 }
  0xe5   :  { %v366_v15 = vpop.eup %365 }
  0xe6   :  { %v116_v16 = vadd.f32 1.0, %v366_v15 }
  0xe8   :  { %367 = vrcp.f32 %v116_v16 }
  0xf2   :  { %v368_v17 = vpop.eup %367 }
  0xf3   :  { %v119_v18 = vmul.f32 %v368_v17, %v110_v12 }
  0xf5   :  { %337 = vmatmul.mubr.msk.f32.vlgmr.msra.gmra.mrb[0].mxu1 %vm131_vm3, %v119_v18 }
 0x1c8   :  { %v201_v26 = vpop.f32.mrb[0].mxu1 }
 0x1c9   :  { %v202_v27 = vadd.f32 %v306_v25, %v201_v26  ;;  %v338_v28 = vpop.f32.mrb[1].mxu1 }
 0x1cb   :  { %v308_v29 = vmul.f32 -1.442695, %v202_v27 }
 0x1cd   :  { %369 = vpow2.f32 %v308_v29 }
 0x1d7   :  { %v370_v30 = vpop.eup %369 }
 0x1d8   :  { %v208_v31 = vadd.f32 1.0, %v370_v30 }
 0x1da   :  { %371 = vrcp.f32 %v208_v31 }
 0x1e4   :  { %v372_v32 = vpop.eup %371 }
 0x1e5   :  { %v211_v33 = vmul.f32 %v372_v32, %v202_v27 }
 0x1e7   :  { %348 = vmatmul.mubr.msk.f32.vlgmr.msra.gmra.mrb[2].mxu0 %vm131_vm3, %v211_v33 }
 0x2ba   :  { %v292_v35 = vpop.f32.mrb[2].mxu0 }
 0x2bb   :  { %v293_v36 = vadd.f32 %v309_v34, %v292_v35  ;;  %v349_v37 = vpop.f32.mrb[3].mxu0 }
 0x2bd   :  { %297 = vst.msk [vmem:[%s467_s7] sm:$0xff] %vm296_vm4, %v293_v36 }

</bundles_post_ra>
